<compile_context>
chip_gen: v7x
topology: tpu7x:2x2x1
jax: 0.10.0
libtpu: 0.0.40
codegen_flags: <defaults>
</compile_context>

<pallas_src>
import functools

import jax
import jax.numpy as jnp
from jax import lax
from jax.experimental import pallas as pl
from jax.experimental.pallas import tpu as pltpu


def _global_gnn_kernel(A_ref, h_ref, wh0_ref, wh1_ref, wh2_ref,
                       whf0_ref, whf1_ref, hout_ref, mean_ref,
                       *, step, fuse_A, matmul_dtype):
    f32 = jnp.float32
    A = A_ref[0]                                   # (N, N) f32
    h = h_ref[0]                                   # (N, H) f32
    # Weights are already split / transposed / cast in the wrapper.
    wh0, wh1, wh2 = wh0_ref[...], wh1_ref[...], wh2_ref[...]      # (H, H) bf16
    whf0, whf1 = whf0_ref[...], whf1_ref[...]                     # (H, H) bf16

    hb = h.astype(matmul_dtype)                    # reused by corr and step 0
    if fuse_A:
        # corr = h @ h.T without materialising a transpose: contract last dims.
        corr = lax.dot_general(hb, hb, (((1,), (1,)), ((), ())),
                               preferred_element_type=f32)        # (N, N) f32
        # ||row||_2 normalisation as rsqrt * multiply (EUP slot) instead of
        # sqrt + vector divide.
        inv_norm = lax.rsqrt(jnp.sum(corr * corr, axis=1, keepdims=True))
        A = A + corr * inv_norm

    Ab = A.astype(matmul_dtype)                    # hoisted, loop-invariant

    acc = jnp.zeros_like(h) if step > 1 else None
    for s in range(step):                          # static unroll (step: int)
        if s > 0:
            hb = h.astype(matmul_dtype)
        # Three small (N,H)x(H,H) dots instead of one (N,3H) dot + lane slices.
        hw0 = jnp.dot(hb, wh0, preferred_element_type=f32)        # (N, H)
        hw1 = jnp.dot(hb, wh1, preferred_element_type=f32)
        hw2 = jnp.dot(hb, wh2, preferred_element_type=f32)
        a_hw0 = jnp.dot(Ab, hw0.astype(matmul_dtype),
                        preferred_element_type=f32)               # (N, H)
        ab = a_hw0.astype(matmul_dtype)
        hf0 = jnp.dot(ab, whf0, preferred_element_type=f32)
        hf1 = jnp.dot(ab, whf1, preferred_element_type=f32)
        gate = jnp.maximum(hf0 + hw1, 0.0)                        # f32 gate math
        h = hw2 + gate * hf1
        if step > 1:
            acc = acc + h

    hout_ref[0] = h.astype(hout_ref.dtype)
    if step > 1:
        mean_ref[0] = (acc * (1.0 / float(step))).astype(mean_ref.dtype)
    else:
        mean_ref[0] = h.astype(mean_ref.dtype)


def global_gnn_forward(A_global, hidden, w_h, w_hf, *, step=1, fuse_A=True,
                       matmul_dtype=jnp.bfloat16):
    """Batched Global_GNN forward.  Accepts (N,N)/(N,H) or (B,N,N)/(B,N,H)."""
    unbatched = hidden.ndim == 2
    if unbatched:
        A_global = A_global[None]
        hidden = hidden[None]
    B, N, H = hidden.shape
    assert A_global.shape == (B, N, N)
    assert w_h.shape == (3 * H, H) and w_hf.shape == (2 * H, H)

    A_global = A_global.astype(jnp.float32)
    hidden = hidden.astype(jnp.float32)

    # Hoisted out of the kernel: split the fused weights and pre-transpose so
    # each in-kernel matmul is a plain (N,H)x(H,H) contraction; cast once to
    # the MXU dtype (one-time XLA cost, re-used by every grid step).
    wt = w_h.astype(jnp.float32).T                 # (H, 3H)
    wft = w_hf.astype(jnp.float32).T               # (H, 2H)
    wh0 = wt[:, 0 * H:1 * H].astype(matmul_dtype)
    wh1 = wt[:, 1 * H:2 * H].astype(matmul_dtype)
    wh2 = wt[:, 2 * H:3 * H].astype(matmul_dtype)
    whf0 = wft[:, 0 * H:1 * H].astype(matmul_dtype)
    whf1 = wft[:, 1 * H:2 * H].astype(matmul_dtype)

    kernel = functools.partial(_global_gnn_kernel, step=step, fuse_A=fuse_A,
                               matmul_dtype=matmul_dtype)

    graph_spec_A = pl.BlockSpec((1, N, N), lambda b: (b, 0, 0))
    graph_spec_h = pl.BlockSpec((1, N, H), lambda b: (b, 0, 0))
    weight_spec = pl.BlockSpec((H, H), lambda b: (0, 0))

    # Rough per-graph VMEM working-set estimate; only raise the scoped limit
    # when the default (32 MiB) would not cover it.  Capped at 64 MiB so the
    # same setting is valid on v7x (64 MiB physical VMEM per TC).
    w_itemsize = jnp.dtype(matmul_dtype).itemsize
    block_bytes = 4 * (2 * N * N + 6 * N * H) + w_itemsize * (N * N + 5 * H * H)
    vmem_limit = None
    if 2 * block_bytes > 32 * 1024 * 1024:
        vmem_limit = min(4 * block_bytes, 64 * 1024 * 1024)
        # TODO(synk): for N large enough that a single (N,N) A block exceeds
        # v7x's 64 MiB VMEM, tile A (row-parallel grid + "arbitrary" column
        # reduction with a VMEM accumulator) instead of whole-array blocks.

    h_out, h_mean = pl.pallas_call(
        kernel,
        out_shape=(jax.ShapeDtypeStruct((B, N, H), jnp.float32),
                   jax.ShapeDtypeStruct((B, N, H), jnp.float32)),
        grid=(B,),
        in_specs=[graph_spec_A, graph_spec_h,
                  weight_spec, weight_spec, weight_spec,
                  weight_spec, weight_spec],
        out_specs=(graph_spec_h, graph_spec_h),
        compiler_params=pltpu.CompilerParams(
            dimension_semantics=("parallel",),
            vmem_limit_bytes=vmem_limit),
    )(A_global, hidden, wh0, wh1, wh2, whf0, whf1)

    if unbatched:
        return h_out[0], h_mean[0]
    return h_out, h_mean


def _reference_forward_f32(A, h, w_h, w_hf, *, step, fuse_A):
    """Pure-JAX f32 reference mirroring the PyTorch forward (single graph)."""
    H = h.shape[-1]
    if fuse_A:
        corr = h @ h.T
        norm = jnp.linalg.norm(corr, axis=1, keepdims=True)
        A = A + corr / norm
    seqs = []
    for _ in range(step):
        hw = h @ w_h.T
        hw0, hw1, hw2 = hw[:, :H], hw[:, H:2 * H], hw[:, 2 * H:]
        hf = (A @ hw0) @ w_hf.T
        hf0, hf1 = hf[:, :H], hf[:, H:]
        gate = jnp.maximum(hf0 + hw1, 0.0)
        h = hw2 + gate * hf1
        seqs.append(h)
    return h, jnp.mean(jnp.stack(seqs, axis=1), axis=1)


def _reference_forward_mirror(A, h, w_h, w_hf, *, step, fuse_A, matmul_dtype):
    """Pure-JAX reference mirroring the kernel numerics (bf16 MXU inputs)."""
    f32 = jnp.float32
    H = h.shape[-1]
    wt, wft = w_h.T, w_hf.T
    wh0 = wt[:, :H].astype(matmul_dtype)
    wh1 = wt[:, H:2 * H].astype(matmul_dtype)
    wh2 = wt[:, 2 * H:].astype(matmul_dtype)
    whf0 = wft[:, :H].astype(matmul_dtype)
    whf1 = wft[:, H:].astype(matmul_dtype)
    if fuse_A:
        hb = h.astype(matmul_dtype)
        corr = lax.dot_general(hb, hb, (((1,), (1,)), ((), ())),
                               preferred_element_type=f32)
        inv_norm = lax.rsqrt(jnp.sum(corr * corr, axis=1, keepdims=True))
        A = A + corr * inv_norm
    Ab = A.astype(matmul_dtype)
    acc = jnp.zeros_like(h)
    for _ in range(step):
        hb = h.astype(matmul_dtype)
        hw0 = jnp.dot(hb, wh0, preferred_element_type=f32)
        hw1 = jnp.dot(hb, wh1, preferred_element_type=f32)
        hw2 = jnp.dot(hb, wh2, preferred_element_type=f32)
        a_hw0 = jnp.dot(Ab, hw0.astype(matmul_dtype), preferred_element_type=f32)
        ab = a_hw0.astype(matmul_dtype)
        hf0 = jnp.dot(ab, whf0, preferred_element_type=f32)
        hf1 = jnp.dot(ab, whf1, preferred_element_type=f32)
        gate = jnp.maximum(hf0 + hw1, 0.0)
        h = hw2 + gate * hf1
        acc = acc + h
    return h, acc * (1.0 / float(step))


if __name__ == "__main__":
    B = 2            # number of graphs (grid "parallel" axis)
    N = 8            # nodes per graph
    H = 32           # hidden_size
    STEP = 2
    FUSE_A = True

    key = jax.random.PRNGKey(0)
    k1, k2, k3, k4 = jax.random.split(key, 4)
    A_global = jax.random.normal(k1, (B, N, N), dtype=jnp.float32)
    hidden = jax.random.normal(k2, (B, N, H), dtype=jnp.float32)
    # Deterministic parameter init (module's __init__ only defines shapes).
    w_h = jax.random.normal(k3, (3 * H, H), dtype=jnp.float32) * 0.1
    w_hf = jax.random.normal(k4, (2 * H, H), dtype=jnp.float32) * 0.1

    h_out, h_mean = global_gnn_forward(A_global, hidden, w_h, w_hf,
                                       step=STEP, fuse_A=FUSE_A)
    jax.block_until_ready((h_out, h_mean))

    # (1) Tight check against a pure-JAX reference with the same numerics
    #     (bf16 MXU inputs, f32 accumulation, rsqrt normalisation).
    for b in range(B):
        m_out, m_mean = _reference_forward_mirror(
            A_global[b], hidden[b], w_h, w_hf,
            step=STEP, fuse_A=FUSE_A, matmul_dtype=jnp.bfloat16)
        assert jnp.allclose(h_out[b], m_out, atol=2e-3, rtol=2e-3)
        assert jnp.allclose(h_mean[b], m_mean, atol=2e-3, rtol=2e-3)

    # (2) Sanity check against the full-f32 PyTorch-equivalent reference
    #     (tolerance loosened because the MXU is fed bf16).
    def _rel_err(x, y):
        return float(jnp.linalg.norm(x - y) /
                     jnp.maximum(jnp.linalg.norm(y), 1e-6))

    for b in range(B):
        r_out, r_mean = _reference_forward_f32(
            A_global[b], hidden[b], w_h, w_hf, step=STEP, fuse_A=FUSE_A)
        assert _rel_err(h_out[b], r_out) < 0.1
        assert _rel_err(h_mean[b], r_mean) < 0.1

    print("KERNEL_OK")
</pallas_src>

<mosaic_0001>
module attributes {stable_mosaic.version = 11 : i64} {
  func.func @_global_gnn_kernel(%arg0: i32, %arg1: memref<1x8x8xf32, #tpu.memory_space<vmem>>, %arg2: memref<1x8x32xf32, #tpu.memory_space<vmem>>, %arg3: memref<32x32xbf16, #tpu.memory_space<vmem>>, %arg4: memref<32x32xbf16, #tpu.memory_space<vmem>>, %arg5: memref<32x32xbf16, #tpu.memory_space<vmem>>, %arg6: memref<32x32xbf16, #tpu.memory_space<vmem>>, %arg7: memref<32x32xbf16, #tpu.memory_space<vmem>>, %arg8: memref<1x8x32xf32, #tpu.memory_space<vmem>>, %arg9: memref<1x8x32xf32, #tpu.memory_space<vmem>>) attributes {dimension_semantics = [#tpu.dimension_semantics<parallel>], iteration_bounds = array<i64: 2>, scalar_prefetch = 0 : i64, scratch_operands = 0 : i64, tpu.core_type = #tpu.core_type<tc>, window_params = [{transform_indices = @transform_0, window_bounds = array<i64: 1, 8, 8>}, {transform_indices = @transform_1, window_bounds = array<i64: 1, 8, 32>}, {pipeline_mode = #tpu.pipeline_mode<synchronous>, transform_indices = @transform_2, window_bounds = array<i64: 32, 32>}, {pipeline_mode = #tpu.pipeline_mode<synchronous>, transform_indices = @transform_3, window_bounds = array<i64: 32, 32>}, {pipeline_mode = #tpu.pipeline_mode<synchronous>, transform_indices = @transform_4, window_bounds = array<i64: 32, 32>}, {pipeline_mode = #tpu.pipeline_mode<synchronous>, transform_indices = @transform_5, window_bounds = array<i64: 32, 32>}, {pipeline_mode = #tpu.pipeline_mode<synchronous>, transform_indices = @transform_6, window_bounds = array<i64: 32, 32>}, {transform_indices = @transform_7, window_bounds = array<i64: 1, 8, 32>}, {transform_indices = @transform_8, window_bounds = array<i64: 1, 8, 32>}]} {
    %c0 = arith.constant 0 : index
    %c0_0 = arith.constant 0 : index
    %c0_1 = arith.constant 0 : index
    %0 = vector.load %arg1[%c0, %c0_0, %c0_1] : memref<1x8x8xf32, #tpu.memory_space<vmem>>, vector<1x8x8xf32>
    %1 = vector.shape_cast %0 : vector<1x8x8xf32> to vector<8x8xf32>
    %c0_2 = arith.constant 0 : index
    %c0_3 = arith.constant 0 : index
    %c0_4 = arith.constant 0 : index
    %2 = vector.load %arg2[%c0_2, %c0_3, %c0_4] : memref<1x8x32xf32, #tpu.memory_space<vmem>>, vector<1x8x32xf32>
    %3 = vector.shape_cast %2 : vector<1x8x32xf32> to vector<8x32xf32>
    %c0_5 = arith.constant 0 : index
    %c0_6 = arith.constant 0 : index
    %4 = vector.load %arg3[%c0_5, %c0_6] : memref<32x32xbf16, #tpu.memory_space<vmem>>, vector<32x32xbf16>
    %c0_7 = arith.constant 0 : index
    %c0_8 = arith.constant 0 : index
    %5 = vector.load %arg4[%c0_7, %c0_8] : memref<32x32xbf16, #tpu.memory_space<vmem>>, vector<32x32xbf16>
    %c0_9 = arith.constant 0 : index
    %c0_10 = arith.constant 0 : index
    %6 = vector.load %arg5[%c0_9, %c0_10] : memref<32x32xbf16, #tpu.memory_space<vmem>>, vector<32x32xbf16>
    %c0_11 = arith.constant 0 : index
    %c0_12 = arith.constant 0 : index
    %7 = vector.load %arg6[%c0_11, %c0_12] : memref<32x32xbf16, #tpu.memory_space<vmem>>, vector<32x32xbf16>
    %c0_13 = arith.constant 0 : index
    %c0_14 = arith.constant 0 : index
    %8 = vector.load %arg7[%c0_13, %c0_14] : memref<32x32xbf16, #tpu.memory_space<vmem>>, vector<32x32xbf16>
    %9 = arith.truncf %3 : vector<8x32xf32> to vector<8x32xbf16>
    %cst = arith.constant dense<0.000000e+00> : vector<8x8xf32>
    %10 = tpu.matmul %9, %9, %cst {dimension_numbers = #tpu.dot_dimension_numbers<[1], [1], [0], [0], [0, 0, 1, 0], [], []>} : vector<8x32xbf16>, vector<8x32xbf16>, vector<8x8xf32> -> vector<8x8xf32>
    %11 = arith.mulf %10, %10 : vector<8x8xf32>
    %cst_15 = arith.constant dense<0.000000e+00> : vector<8xf32>
    %12 = vector.multi_reduction <add>, %11, %cst_15 [1] : vector<8x8xf32> to vector<8xf32>
    %13 = vector.shape_cast %12 : vector<8xf32> to vector<8x1xf32>
    %14 = math.rsqrt %13 : vector<8x1xf32>
    %15 = vector.broadcast %14 : vector<8x1xf32> to vector<8x8xf32>
    %16 = arith.mulf %10, %15 : vector<8x8xf32>
    %17 = arith.addf %1, %16 : vector<8x8xf32>
    %18 = arith.truncf %17 : vector<8x8xf32> to vector<8x8xbf16>
    %cst_16 = arith.constant 0.000000e+00 : f32
    %19 = vector.broadcast %cst_16 : f32 to vector<8x32xf32>
    %cst_17 = arith.constant dense<0.000000e+00> : vector<8x32xf32>
    %20 = tpu.matmul %9, %4, %cst_17 {dimension_numbers = #tpu.dot_dimension_numbers<[1], [0], [0], [1], [0, 0, 1, 1], [], []>} : vector<8x32xbf16>, vector<32x32xbf16>, vector<8x32xf32> -> vector<8x32xf32>
    %cst_18 = arith.constant dense<0.000000e+00> : vector<8x32xf32>
    %21 = tpu.matmul %9, %5, %cst_18 {dimension_numbers = #tpu.dot_dimension_numbers<[1], [0], [0], [1], [0, 0, 1, 1], [], []>} : vector<8x32xbf16>, vector<32x32xbf16>, vector<8x32xf32> -> vector<8x32xf32>
    %cst_19 = arith.constant dense<0.000000e+00> : vector<8x32xf32>
    %22 = tpu.matmul %9, %6, %cst_19 {dimension_numbers = #tpu.dot_dimension_numbers<[1], [0], [0], [1], [0, 0, 1, 1], [], []>} : vector<8x32xbf16>, vector<32x32xbf16>, vector<8x32xf32> -> vector<8x32xf32>
    %23 = arith.truncf %20 : vector<8x32xf32> to vector<8x32xbf16>
    %cst_20 = arith.constant dense<0.000000e+00> : vector<8x32xf32>
    %24 = tpu.matmul %18, %23, %cst_20 {dimension_numbers = #tpu.dot_dimension_numbers<[1], [0], [0], [1], [0, 0, 1, 1], [], []>} : vector<8x8xbf16>, vector<8x32xbf16>, vector<8x32xf32> -> vector<8x32xf32>
    %25 = arith.truncf %24 : vector<8x32xf32> to vector<8x32xbf16>
    %cst_21 = arith.constant dense<0.000000e+00> : vector<8x32xf32>
    %26 = tpu.matmul %25, %7, %cst_21 {dimension_numbers = #tpu.dot_dimension_numbers<[1], [0], [0], [1], [0, 0, 1, 1], [], []>} : vector<8x32xbf16>, vector<32x32xbf16>, vector<8x32xf32> -> vector<8x32xf32>
    %cst_22 = arith.constant dense<0.000000e+00> : vector<8x32xf32>
    %27 = tpu.matmul %25, %8, %cst_22 {dimension_numbers = #tpu.dot_dimension_numbers<[1], [0], [0], [1], [0, 0, 1, 1], [], []>} : vector<8x32xbf16>, vector<32x32xbf16>, vector<8x32xf32> -> vector<8x32xf32>
    %28 = arith.addf %26, %21 : vector<8x32xf32>
    %cst_23 = arith.constant 0.000000e+00 : f32
    %29 = vector.broadcast %cst_23 : f32 to vector<8x32xf32>
    %30 = arith.maximumf %28, %29 : vector<8x32xf32>
    %31 = arith.mulf %30, %27 : vector<8x32xf32>
    %32 = arith.addf %22, %31 : vector<8x32xf32>
    %33 = arith.addf %19, %32 : vector<8x32xf32>
    %34 = arith.truncf %32 : vector<8x32xf32> to vector<8x32xbf16>
    %cst_24 = arith.constant dense<0.000000e+00> : vector<8x32xf32>
    %35 = tpu.matmul %34, %4, %cst_24 {dimension_numbers = #tpu.dot_dimension_numbers<[1], [0], [0], [1], [0, 0, 1, 1], [], []>} : vector<8x32xbf16>, vector<32x32xbf16>, vector<8x32xf32> -> vector<8x32xf32>
    %cst_25 = arith.constant dense<0.000000e+00> : vector<8x32xf32>
    %36 = tpu.matmul %34, %5, %cst_25 {dimension_numbers = #tpu.dot_dimension_numbers<[1], [0], [0], [1], [0, 0, 1, 1], [], []>} : vector<8x32xbf16>, vector<32x32xbf16>, vector<8x32xf32> -> vector<8x32xf32>
    %cst_26 = arith.constant dense<0.000000e+00> : vector<8x32xf32>
    %37 = tpu.matmul %34, %6, %cst_26 {dimension_numbers = #tpu.dot_dimension_numbers<[1], [0], [0], [1], [0, 0, 1, 1], [], []>} : vector<8x32xbf16>, vector<32x32xbf16>, vector<8x32xf32> -> vector<8x32xf32>
    %38 = arith.truncf %35 : vector<8x32xf32> to vector<8x32xbf16>
    %cst_27 = arith.constant dense<0.000000e+00> : vector<8x32xf32>
    %39 = tpu.matmul %18, %38, %cst_27 {dimension_numbers = #tpu.dot_dimension_numbers<[1], [0], [0], [1], [0, 0, 1, 1], [], []>} : vector<8x8xbf16>, vector<8x32xbf16>, vector<8x32xf32> -> vector<8x32xf32>
    %40 = arith.truncf %39 : vector<8x32xf32> to vector<8x32xbf16>
    %cst_28 = arith.constant dense<0.000000e+00> : vector<8x32xf32>
    %41 = tpu.matmul %40, %7, %cst_28 {dimension_numbers = #tpu.dot_dimension_numbers<[1], [0], [0], [1], [0, 0, 1, 1], [], []>} : vector<8x32xbf16>, vector<32x32xbf16>, vector<8x32xf32> -> vector<8x32xf32>
    %cst_29 = arith.constant dense<0.000000e+00> : vector<8x32xf32>
    %42 = tpu.matmul %40, %8, %cst_29 {dimension_numbers = #tpu.dot_dimension_numbers<[1], [0], [0], [1], [0, 0, 1, 1], [], []>} : vector<8x32xbf16>, vector<32x32xbf16>, vector<8x32xf32> -> vector<8x32xf32>
    %43 = arith.addf %41, %36 : vector<8x32xf32>
    %cst_30 = arith.constant 0.000000e+00 : f32
    %44 = vector.broadcast %cst_30 : f32 to vector<8x32xf32>
    %45 = arith.maximumf %43, %44 : vector<8x32xf32>
    %46 = arith.mulf %45, %42 : vector<8x32xf32>
    %47 = arith.addf %37, %46 : vector<8x32xf32>
    %48 = arith.addf %33, %47 : vector<8x32xf32>
    %c0_31 = arith.constant 0 : index
    %c0_32 = arith.constant 0 : index
    %c0_33 = arith.constant 0 : index
    %49 = vector.load %arg8[%c0_31, %c0_32, %c0_33] : memref<1x8x32xf32, #tpu.memory_space<vmem>>, vector<1x8x32xf32>
    %50 = vector.shape_cast %49 : vector<1x8x32xf32> to vector<8x32xf32>
    %51 = vector.shape_cast %47 : vector<8x32xf32> to vector<1x8x32xf32>
    tpu.vector_store %arg8[%c0_31, %c0_32, %c0_33], %51 {strides = array<i32>} : memref<1x8x32xf32, #tpu.memory_space<vmem>>, vector<1x8x32xf32>,
    %cst_34 = arith.constant 5.000000e-01 : f32
    %52 = vector.broadcast %cst_34 : f32 to vector<8x32xf32>
    %53 = arith.mulf %48, %52 : vector<8x32xf32>
    %c0_35 = arith.constant 0 : index
    %c0_36 = arith.constant 0 : index
    %c0_37 = arith.constant 0 : index
    %54 = vector.load %arg9[%c0_35, %c0_36, %c0_37] : memref<1x8x32xf32, #tpu.memory_space<vmem>>, vector<1x8x32xf32>
    %55 = vector.shape_cast %54 : vector<1x8x32xf32> to vector<8x32xf32>
    %56 = vector.shape_cast %53 : vector<8x32xf32> to vector<1x8x32xf32>
    tpu.vector_store %arg9[%c0_35, %c0_36, %c0_37], %56 {strides = array<i32>} : memref<1x8x32xf32, #tpu.memory_space<vmem>>, vector<1x8x32xf32>,
    return
  }
  func.func @transform_0(%arg0: i32) -> (i32, i32, i32) {
    %c0_i32 = arith.constant 0 : i32
    %c0_i32_0 = arith.constant 0 : i32
    %c0_i32_1 = arith.constant 0 : i32
    return %arg0, %c0_i32, %c0_i32_0 : i32, i32, i32
  }
  func.func @transform_1(%arg0: i32) -> (i32, i32, i32) {
    %c0_i32 = arith.constant 0 : i32
    %c0_i32_0 = arith.constant 0 : i32
    %c0_i32_1 = arith.constant 0 : i32
    return %arg0, %c0_i32, %c0_i32_0 : i32, i32, i32
  }
  func.func @transform_2(%arg0: i32) -> (i32, i32) {
    %c0_i32 = arith.constant 0 : i32
    %c0_i32_0 = arith.constant 0 : i32
    %c0_i32_1 = arith.constant 0 : i32
    return %c0_i32, %c0_i32_0 : i32, i32
  }
  func.func @transform_3(%arg0: i32) -> (i32, i32) {
    %c0_i32 = arith.constant 0 : i32
    %c0_i32_0 = arith.constant 0 : i32
    %c0_i32_1 = arith.constant 0 : i32
    return %c0_i32, %c0_i32_0 : i32, i32
  }
  func.func @transform_4(%arg0: i32) -> (i32, i32) {
    %c0_i32 = arith.constant 0 : i32
    %c0_i32_0 = arith.constant 0 : i32
    %c0_i32_1 = arith.constant 0 : i32
    return %c0_i32, %c0_i32_0 : i32, i32
  }
  func.func @transform_5(%arg0: i32) -> (i32, i32) {
    %c0_i32 = arith.constant 0 : i32
    %c0_i32_0 = arith.constant 0 : i32
    %c0_i32_1 = arith.constant 0 : i32
    return %c0_i32, %c0_i32_0 : i32, i32
  }
  func.func @transform_6(%arg0: i32) -> (i32, i32) {
    %c0_i32 = arith.constant 0 : i32
    %c0_i32_0 = arith.constant 0 : i32
    %c0_i32_1 = arith.constant 0 : i32
    return %c0_i32, %c0_i32_0 : i32, i32
  }
  func.func @transform_7(%arg0: i32) -> (i32, i32, i32) {
    %c0_i32 = arith.constant 0 : i32
    %c0_i32_0 = arith.constant 0 : i32
    %c0_i32_1 = arith.constant 0 : i32
    return %arg0, %c0_i32, %c0_i32_0 : i32, i32, i32
  }
  func.func @transform_8(%arg0: i32) -> (i32, i32, i32) {
    %c0_i32 = arith.constant 0 : i32
    %c0_i32_0 = arith.constant 0 : i32
    %c0_i32_1 = arith.constant 0 : i32
    return %arg0, %c0_i32, %c0_i32_0 : i32, i32, i32
  }
}

</mosaic_0001>

<bundles_post_ra>
// kernel: tpu_custom_call.1
= control target key start
LH: loop header
LB: loop body
LE: loop exit
PB: predicated region body
PF: predicated region fallthrough
CT: control target
= control target key end

     0   :  { %s2391_s0 = inlined_call_operand.hbm [shape: f32[2,8,8], index: 0, kind: input, shape index: {}]   ;;  %s2392_s1 = inlined_call_operand.hbm [shape: f32[2,8,32], index: 1, kind: input, shape index: {}]   ;;  %s2393_s2 = inlined_call_operand.hbm [shape: bf16[32,32], index: 2, kind: input, shape index: {}]   ;;  %s2394_s3 = inlined_call_operand.hbm [shape: bf16[32,32], index: 3, kind: input, shape index: {}]   ;;  %s2395_s4 = inlined_call_operand.hbm [shape: bf16[32,32], index: 4, kind: input, shape index: {}]   ;;  %s2396_s5 = inlined_call_operand.vmem [shape: bf16[32,32], index: 5, kind: input, shape index: {}]   ;;  %s2397_s6 = inlined_call_operand.hbm [shape: bf16[32,32], index: 6, kind: input, shape index: {}]   ;;  %s2398_s7 = inlined_call_operand.hbm [shape: f32[2,8,32], index: 7, kind: output, shape index: {0}]   ;;  %s2399_s8 = inlined_call_operand.hbm [shape: f32[2,8,32], index: 8, kind: output, shape index: {1}]  }
   0x1   :  { %2404 = sst [smem:[#allocation24_spill]] %s2393_s2 }
   0x2   :  { %2405 = sst [smem:[#allocation25_spill]] %s2394_s3 }
   0x3   :  { %2406 = sst [smem:[#allocation26_spill]] %s2395_s4 }
   0x4   :  { %2407 = sst [smem:[#allocation27_spill]] %s2397_s6 }
   0x5   :  { %14 = vsyncpa [#allocation3], 0 }
   0x6   :  { %16 = vsyncpa [#allocation3 + $0x1], 0 }
   0x7   :  { %17 = vsyncpa [#allocation6], 0 }
   0x8   :  { %19 = vsyncpa [#allocation6 + $0x1], 0 }
   0x9   :  { %20 = vsyncpa [#allocation9], 0 }
   0xa   :  { %21 = vsyncpa [#allocation12], 0 }
   0xb   :  { %22 = vsyncpa [#allocation4], 0 }
   0xc   :  { %24 = vsyncpa [#allocation4 + $0x1], 0 }
   0xd   :  { %25 = vsyncpa [#allocation15], 0 }
   0xe   :  { %27 = vsyncpa [#allocation15 + $0x1], 0  ;;  %s1921_s27 = smov 0   ;;  %s1923_s28 = smov 0  }
   0xf   :  { %s1925_s29 = smov 0   ;;  %s1927_s30 = smov 0  }
  0x10 LB: > { %s1864_s9 = smov [#allocation7]   ;;  %s1942_s11 = sadd.s32 4294967295, %s1862_s30   ;;  %s1862_s30 = sphi %s1927_s30, %s2437_s30   ;;  %s1858_s29 = sphi %s1925_s29, %s2436_s29   ;;  %s1854_s28 = sphi %s1923_s28, %s2435_s28   ;;  %s1850_s27 = sphi %s1921_s27, %s2434_s27  }
  0x11   : > { %s259_s10 = sshll.u32 %s1864_s9, 4  ;;  %p1273_p0 = scmp.ge.s32.totalorder %s1862_s30, 1  ;;  %s1947_s10 = int_to_ptr.vmem [resolvable:$true] %s259_s10 }
  0x12   : > { %p2400_p1 = scmp.eq.s32.totalorder %s1942_s11, 0  ;;  %p247_p2 = scmp.lt.s32.totalorder %s1862_s30, 3 }
  0x13   : > { %s1865_s13 = smov [#allocation8]   ;;  %s1866_s16 = smov [#allocation10]  }
  0x14   : > { %p1949_p3 = pnand %p1273_p0, %p247_p2  ;;  %s272_s14 = sshll.u32 %s1865_s13, 4  ;;  %s1962_s14 = int_to_ptr.vmem [resolvable:$true] %s272_s14 }
  0x15   : > { %s285_s17 = sshll.u32 %s1866_s16, 4  ;;  %s2410_s2 = sld [smem:[#allocation24_spill]]  ;;  %s1964_s17 = int_to_ptr.vmem [resolvable:$true] %s285_s17 }
  0x16   : > { %s2408_s12 = scalar_select %p1949_p3, 1, 0 }
  0x17   : > { %p1487_p5 = pneg %p1949_p3 }
  0x19   : > { %p1958_p6 = pnand %p1487_p5, %p2400_p1 }
  0x1b   : > { %s1576_s20 = scalar_lea.hbm %s2410_s2, 256  ;;  %p1974_p8 = pneg %p1958_p6 }
  0x1c   : > { %p1577_p7 = scmp.ne.s32.totalorder %s2410_s2, %s1576_s20  ;;  %p1583_p11 = scmp.lt.u32.totalorder %s1576_s20, %s2410_s2 }
  0x1e   : > { %p1579_p9 = pnand %p1974_p8, %p1577_p7 }
  0x20   : > { %p1580_p10 = pneg %p1579_p9 }
  0x22   : > { %p1585_p12 = pnand %p1583_p11, %p1580_p10 }
  0x24   : > { %1588 = shalt.err (!%p1585_p12)
}
  0x25   : > { %s1589_s26 = scalar_lea.vmem %s1947_s10, 256  ;;  %p1597_p5 = scmp.lt.s32.totalorder %s1947_s10, %s1947_s10 }
  0x26   : > { %p1590_p13 = scmp.ne.s32.totalorder %s1947_s10, %s1589_s26  ;;  %p1598_p4 = scmp.lt.s32.totalorder %s1589_s26, %s1589_s26 }
  0x28   : > { %p1592_p0 = pnand %p1590_p13, %p1974_p8  ;;  %p1599_p7 = por %p1598_p4, %p1597_p5 }
  0x2a   : > { %p1593_p2 = pneg %p1592_p0 }
  0x2c   : > { %p1600_p9 = pnand %p1599_p7, %p1593_p2 }
  0x2e   : > { %1603 = shalt.err (!%p1600_p9)
}
  0x2f   : > { %s1867_s9 = smov 64   ;;  %s1868_s13 = smov 4  }
  0x30   : > { %1490 = dma.hbm_to_vmem [thread:$0]  (!%p1958_p6), %s2410_s2, 256, %s1947_s10, [#allocation6], %s1867_s9, %s1867_s9, %s1868_s13  }
  0x31   : > { %s2412_s3 = sld [smem:[#allocation25_spill]] }
  0x37   : > { %s1604_s21 = scalar_lea.hbm %s2412_s3, 256 }
  0x38   : > { %p1605_p4 = scmp.ne.s32.totalorder %s2412_s3, %s1604_s21  ;;  %p1611_p12 = scmp.lt.u32.totalorder %s1604_s21, %s2412_s3 }
  0x3a   : > { %p1607_p10 = pnand %p1605_p4, %p1974_p8 }
  0x3c   : > { %p1608_p11 = pneg %p1607_p10 }
  0x3e   : > { %p1613_p13 = pnand %p1611_p12, %p1608_p11 }
  0x40   : > { %1616 = shalt.err (!%p1613_p13)
}
  0x41   : > { %s1617_s10 = scalar_lea.vmem %s1962_s14, 256  ;;  %p1625_p7 = scmp.lt.s32.totalorder %s1962_s14, %s1962_s14 }
  0x42   : > { %p1618_p0 = scmp.ne.s32.totalorder %s1962_s14, %s1617_s10  ;;  %p1626_p9 = scmp.lt.s32.totalorder %s1617_s10, %s1617_s10 }
  0x44   : > { %p1620_p2 = pnand %p1618_p0, %p1974_p8  ;;  %p1627_p4 = por %p1626_p9, %p1625_p7 }
  0x46   : > { %p1621_p5 = pneg %p1620_p2 }
  0x48   : > { %p1628_p10 = pnand %p1627_p4, %p1621_p5 }
  0x4a   : > { %1631 = shalt.err (!%p1628_p10)
}
  0x4b   : > { %1493 = dma.hbm_to_vmem [thread:$0]  (!%p1958_p6), %s2412_s3, 256, %s1962_s14, [#allocation9], %s1867_s9, %s1867_s9, %s1868_s13  }
  0x4c   : > { %s2413_s4 = sld [smem:[#allocation26_spill]] }
  0x52   : > { %s1632_s21 = scalar_lea.hbm %s2413_s4, 256 }
  0x53   : > { %p1633_p11 = scmp.ne.s32.totalorder %s2413_s4, %s1632_s21  ;;  %p1639_p0 = scmp.lt.u32.totalorder %s1632_s21, %s2413_s4 }
  0x55   : > { %p1635_p12 = pnand %p1633_p11, %p1974_p8 }
  0x57   : > { %p1636_p13 = pneg %p1635_p12 }
  0x59   : > { %p1641_p2 = pnand %p1639_p0, %p1636_p13 }
  0x5b   : > { %1644 = shalt.err (!%p1641_p2)
}
  0x5c   : > { %s1645_s14 = scalar_lea.vmem %s1964_s17, 256  ;;  %p1653_p4 = scmp.lt.s32.totalorder %s1964_s17, %s1964_s17 }
  0x5d   : > { %p1646_p5 = scmp.ne.s32.totalorder %s1964_s17, %s1645_s14  ;;  %p1654_p10 = scmp.lt.s32.totalorder %s1645_s14, %s1645_s14 }
  0x5f   : > { %p1648_p7 = pnand %p1646_p5, %p1974_p8  ;;  %p1655_p11 = por %p1654_p10, %p1653_p4 }
  0x61   : > { %p1649_p9 = pneg %p1648_p7 }
  0x63   : > { %p1656_p12 = pnand %p1655_p11, %p1649_p9 }
  0x65   : > { %1659 = shalt.err (!%p1656_p12)
}
  0x66   : > { %1496 = dma.hbm_to_vmem [thread:$0]  (!%p1958_p6), %s2413_s4, 256, %s1964_s17, [#allocation9], %s1867_s9, %s1867_s9, %s1868_s13  }
  0x67   : > { %s1869_s18 = smov [#allocation11]   ;;  %s2414_s6 = sld [smem:[#allocation27_spill]] }
  0x68   : > { %s301_s19 = sshll.u32 %s1869_s18, 4  ;;  %s302_s19 = int_to_ptr.vmem [resolvable:$true] %s301_s19 }
  0x6d   : > { %s1660_s22 = scalar_lea.hbm %s2414_s6, 256 }
  0x6e   : > { %p1661_p13 = scmp.ne.s32.totalorder %s2414_s6, %s1660_s22  ;;  %p1667_p5 = scmp.lt.u32.totalorder %s1660_s22, %s2414_s6 }
  0x70   : > { %p1663_p0 = pnand %p1661_p13, %p1974_p8 }
  0x72   : > { %p1664_p2 = pneg %p1663_p0 }
  0x74   : > { %p1669_p7 = pnand %p1667_p5, %p1664_p2 }
  0x76   : > { %1672 = shalt.err (!%p1669_p7)
}
  0x77   : > { %s1673_s17 = scalar_lea.vmem %s302_s19, 256  ;;  %p1681_p11 = scmp.lt.s32.totalorder %s302_s19, %s302_s19 }
  0x78   : > { %p1674_p9 = scmp.ne.s32.totalorder %s302_s19, %s1673_s17  ;;  %p1682_p12 = scmp.lt.s32.totalorder %s1673_s17, %s1673_s17 }
  0x7a   : > { %p1676_p4 = pnand %p1674_p9, %p1974_p8  ;;  %p1683_p1 = por %p1682_p12, %p1681_p11 }
  0x7c   : > { %p1677_p10 = pneg %p1676_p4 }
  0x7e   : > { %p1684_p3 = pnand %p1683_p1, %p1677_p10 }
  0x80   : > { %1687 = shalt.err (!%p1684_p3)
}
  0x81   : > { %1499 = dma.hbm_to_vmem [thread:$0]  (!%p1958_p6), %s2414_s6, 256, %s302_s19, [#allocation12], %s1867_s9, %s1867_s9, %s1868_s13  }
  0x82   : > { %s1272_s15 = sadd.s32 4294967294, %s1862_s30   ;;  %s2073_s23 = sadd.s32 1, %s1862_s30  }
  0x83   : > { %s37_s18 = ssub.s32 %s1862_s30, %s2073_s23  ;;  %s40_s20 = sadd.s32 1, %s1858_s29 }
  0x84   : > { %p38_p1 = scmp.eq.s32.totalorder %s37_s18, 0  ;;  %p47_p3 = scmp.ne.s32.totalorder %s1858_s29, %s1854_s28 }
  0x85   : > { %p48_p8 = scmp.eq.s32.totalorder %s1862_s30, 0  ;;  %p53_p13 = scmp.ne.s32.totalorder %s1854_s28, %s1850_s27 }
  0x86   : > { %s2084_s21 = scalar_select %p38_p1, %s1858_s29, %s40_s20  }
  0x87   : > { %p2086_p0 = por %p48_p8, %p47_p3  ;;  %p2417_p2 = scmp.eq.s32.totalorder %s1942_s11, 0 }
  0x88   : > { %2415 = sst [smem:[#allocation23_spill]] %s2084_s21  ;;  %p208_p5 = scmp.eq.s32.totalorder %s1942_s11, 1 }
  0x89   : > { %p2092_p6 = por %p2417_p2, %p53_p13  ;;  %p214_p7 = scmp.eq.s32.totalorder %s1272_s15, 1 }
  0x8a   : > { %p1518_p9 = scmp.lt.s32.totalorder %s1862_s30, 2  ;;  %s315_s13 = sand.u32 1, %s1858_s29  }
  0x8b   : > { %s2418_s9 = scalar_select %p2092_p6, 1, 0 }
  0x8c   : > { %p2099_p4 = por %p208_p5, %p47_p3  ;;  %p2103_p10 = por %p214_p7, %p53_p13 }
  0x8d   : > { %s2107_s25 = sshll.u32 %s315_s13, 3  ;;  %s1280_s26 = sshll.u32 %s1862_s30, 7 }
  0x8e   : > { %s2419_s19 = scalar_select %p2099_p4, 1, 0 }
  0x8f   : > { %s2420_s24 = scalar_select %p2103_p10, 1, 0 }
  0x90   : > { %s2113_s10 = scalar_lea.hbm %s2391_s0, %s1280_s26  ;;  %s319_s16 = scalar_lea.vmem [#allocation2], %s2107_s25 }
  0x91   : > { %s326_s15 = sshll.u32 %s319_s16, 4  ;;  %p2120_p11 = pnand %p1518_p9, %p2086_p0  ;;  %s2116_s15 = int_to_ptr.vmem [resolvable:$true] %s326_s15 }
  0x92   : > { %s2127_s14 = scalar_lea.hbm %s2392_s1, %s1280_s26  ;;  %s333_s17 = sand.u32 1, %s1862_s30  }
  0x93   : > { %s316_s3 = scalar_lea.sflag [#allocation3], %s315_s13  ;;  %s1688_s4 = scalar_lea.hbm %s2113_s10, 128 }
  0x94   : > { %p1689_p12 = scmp.ne.s32.totalorder %s2113_s10, %s1688_s4  ;;  %p1690_p1 = pneg %p2120_p11 }
  0x95   : > { %s1693_s6 = scalar_lea.hbm %s2391_s0, 256  ;;  %p1694_p13 = scmp.lt.u32.totalorder %s2113_s10, %s2391_s0 }
  0x96   : > { %p1691_p3 = pnand %p1690_p1, %p1689_p12  ;;  %p1695_p0 = scmp.lt.u32.totalorder %s1693_s6, %s1688_s4 }
  0x97   : > { %p1697_p5 = scmp.lt.u32.totalorder %s1688_s4, %s2113_s10 }
  0x98   : > { %p1692_p8 = pneg %p1691_p3  ;;  %p1696_p2 = por %p1695_p0, %p1694_p13 }
  0x9a   : > { %p1698_p7 = por %p1697_p5, %p1696_p2 }
  0x9c   : > { %p1699_p9 = pnand %p1698_p7, %p1692_p8 }
  0x9e   : > { %1702 = shalt.err (!%p1699_p9)
}
  0x9f   : > { %s1703_s13 = scalar_lea.vmem %s2116_s15, 128  ;;  %s1870_s26 = smov [#allocation2]  }
  0xa0   : > { %p1704_p12 = scmp.ne.s32.totalorder %s2116_s15, %s1703_s13  ;;  %s1708_s20 = sshll.u32 %s1870_s26, 4  ;;  %s1709_s20 = int_to_ptr.vmem [resolvable:$false] %s1708_s20 }
  0xa1   : > { %s1710_s21 = scalar_lea.vmem %s1709_s20, 256  ;;  %p1711_p4 = scmp.lt.s32.totalorder %s2116_s15, %s1709_s20 }
  0xa2   : > { %p1706_p3 = pnand %p1704_p12, %p1690_p1  ;;  %p1712_p13 = scmp.lt.s32.totalorder %s1710_s21, %s1703_s13 }
  0xa4   : > { %p1707_p10 = pneg %p1706_p3  ;;  %p1713_p0 = por %p1712_p13, %p1711_p4 }
  0xa6   : > { %p1714_p2 = pnand %p1713_p0, %p1707_p10 }
  0xa8   : > { %1717 = shalt.err (!%p1714_p2)
}
  0xa9   : > { %1503 = dma.hbm_to_vmem [thread:$0]  (!%p2120_p11), %s2113_s10, 128, %s2116_s15, %s316_s3  }
  0xaa   : > { %s337_s4 = scalar_lea.vmem [#allocation5], %s2107_s25  ;;  %s334_s22 = scalar_lea.sflag [#allocation6], %s333_s17 }
  0xab   : > { %s344_s6 = sshll.u32 %s337_s4, 4  ;;  %s1718_s16 = scalar_lea.hbm %s2127_s14, 128  ;;  %s345_s6 = int_to_ptr.vmem [resolvable:$true] %s344_s6 }
  0xac   : > { %p1719_p4 = scmp.ne.s32.totalorder %s2127_s14, %s1718_s16  ;;  %s1723_s26 = scalar_lea.hbm %s2392_s1, 256 }
  0xad   : > { %p1724_p5 = scmp.lt.u32.totalorder %s2127_s14, %s2392_s1  ;;  %p1725_p7 = scmp.lt.u32.totalorder %s1723_s26, %s1718_s16 }
  0xae   : > { %p1721_p10 = pnand %p1719_p4, %p1690_p1  ;;  %p1727_p12 = scmp.lt.u32.totalorder %s1718_s16, %s2127_s14 }
  0xaf   : > { %p1726_p9 = por %p1725_p7, %p1724_p5 }
  0xb0   : > { %p1722_p8 = pneg %p1721_p10 }
  0xb1   : > { %p1728_p3 = por %p1727_p12, %p1726_p9 }
  0xb3   : > { %p1729_p13 = pnand %p1728_p3, %p1722_p8 }
  0xb5   : > { %1732 = shalt.err (!%p1729_p13)
}
  0xb6   : > { %s1733_s3 = scalar_lea.vmem %s345_s6, 128  ;;  %s1871_s25 = smov [#allocation5]  }
  0xb7   : > { %p1734_p0 = scmp.ne.s32.totalorder %s345_s6, %s1733_s3  ;;  %s1738_s10 = sshll.u32 %s1871_s25, 4  ;;  %s1739_s10 = int_to_ptr.vmem [resolvable:$false] %s1738_s10 }
  0xb8   : > { %s1740_s15 = scalar_lea.vmem %s1739_s10, 256  ;;  %p1741_p10 = scmp.lt.s32.totalorder %s345_s6, %s1739_s10 }
  0xb9   : > { %p1736_p2 = pnand %p1734_p0, %p1690_p1  ;;  %p1742_p6 = scmp.lt.s32.totalorder %s1740_s15, %s1733_s3 }
  0xbb   : > { %p1737_p4 = pneg %p1736_p2  ;;  %p1743_p5 = por %p1742_p6, %p1741_p10 }
  0xbd   : > { %p1744_p7 = pnand %p1743_p5, %p1737_p4 }
  0xbf   : > { %1747 = shalt.err (!%p1744_p7)
}
  0xc0   : > { %1506 = dma.hbm_to_vmem [thread:$0]  (!%p2120_p11), %s2127_s14, 128, %s345_s6, %s334_s22  }
  0xc1   : > { %p2422_p8 = scmp.ne.s32.totalorder %s2408_s12, 0 }
  0xc2   : > { %s2180_s17 = sand.u32 (!%p2422_p8), 1, %s1854_s28   ;;  %p2423_p6 = scmp.ne.s32.totalorder (!%p2422_p8), %s2418_s9, 0 }
  0xc3   : > { %353 = sbr.rel (%p2422_p8) target bundleno = 1738 (0x6ca), region = 48  ;;  %s2183_s4 = sshll.u32 (!%p2422_p8), %s2180_s17, 3 }
  0xc4   : > { %s356_s16 = scalar_lea.sflag (!%p2422_p8), [#allocation3], %s2180_s17  ;;  %s359_s2 = scalar_lea.vmem (!%p2422_p8), [#allocation2], %s2183_s4 }
  0xca   : > { %1821 = dma.done.wait (%p2423_p6), %s356_s16, 128  }
  0xcb   : > { %1823 = vsyncadd (%p2423_p6), %s356_s16, 4294967168  ;;  %s364_s12 = sand.u32 1, %s1942_s11   ;;  %s368_s14 = scalar_lea.vmem [#allocation5], %s2183_s4 }
  0xcc   : > { %s365_s18 = scalar_lea.sflag [#allocation6], %s364_s12 }
  0xcd   : > { %1825 = dma.done.wait (%p2423_p6), %s365_s18, 128  }
  0xce   : > { %1827 = vsyncadd (%p2423_p6), %s365_s18, 4294967168  ;;  %p2424_p11 = scmp.eq.s32.totalorder %s1942_s11, 0 }
  0xd0   : > { %1829 = dma.done.wait (%p2424_p11), [#allocation6], 256   ;;  %p2425_p1 = pmov %p2424_p11 }
  0xd2   : > { %1831 = vsyncadd (%p2425_p1), [#allocation6], 4294967040  ;;  %p2426_p9 = pmov %p2425_p1 }
  0xd3   : > { %p2427_p12 = pmov %p2425_p1 }
  0xd4   : > { %1833 = dma.done.wait (%p2426_p9), [#allocation9], 512  }
  0xd5   : > { %1835 = vsyncadd (%p2427_p12), [#allocation9], 4294966784  ;;  %p2428_p3 = pmov %p2425_p1 }
  0xd6   : > { %p2429_p13 = pmov %p2425_p1 }
  0xd7   : > { %1837 = dma.done.wait (%p2428_p3), [#allocation12], 256  }
  0xd8   : > { %1839 = vsyncadd (%p2429_p13), [#allocation12], 4294967040  ;;  %v1872_v0 = vmov 0.0   ;;  %vm1873_vm0 = vmmov 0   ;;  %v429_v1 = vld [vmem:[%s368_s14] sm:$0xff]  ;;  %vm451_vm1 = vcmask 261120  }
  0xd9   : > { %1357 = vmatprep.subr.bf16.mxu0 %v1872_v0  ;;  %1359 = vmatprep.mubr.msk.bf16.mxu0 %vm1873_vm0, %v1872_v0  ;;  %v450_v2 = vpack.c.bf16 %v429_v1, %v429_v1  ;;  %v1564_v3 = vld [vmem:[#allocation7] sm:$0xff]   ;;  %v1565_v5 = vld [vmem:[#allocation7 + $0x8] sm:$0xff]   ;;  %vm496_vm2 = vcmask 64512   ;;  %vm612_vm3 = vcmask 1043456   ;;  %v1566_v18 = vld [vmem:[#allocation8] sm:$0xff]   ;;  %s1317_s26 = sshll.u32 %s1942_s11, 7 }
  0xda   : > { %1363 = vmatprep.subr.bf16.mxu1 %v1872_v0  ;;  %1367 = vmatprep.mubr.msk.bf16.mxu1 %vm1873_vm0, %v1872_v0  ;;  %v1567_v19 = vld [vmem:[#allocation8 + $0x8] sm:$0xff]   ;;  %v2229_v20 = vld [vmem:[#allocation11] sm:$0xff]   ;;  %v428_v23 = vld [vmem:[%s359_s2] sm:$0xff]  ;;  %s419_s20 = scalar_lea.vmem [#allocation13], %s2183_s4  ;;  %s2306_s10 = scalar_lea.hbm %s2398_s7, %s1317_s26 }
  0xdb   : > { %v453_v4 = vsel %vm451_vm1, %v450_v2, 0  ;;  %1364 = vmatpush3.bf16.msra.mxu1 %v1564_v3  ;;  %v1569_v27 = vld [vmem:[#allocation11 + $0x8] sm:$0xff]   ;;  %v2246_v28 = vld [vmem:[#allocation10] sm:$0xff]   ;;  %v2250_v29 = vld [vmem:[#allocation10 + $0x8] sm:$0xff]   ;;  %s1096_s21 = sshll.u32 %s419_s20, 4  ;;  %s426_s15 = scalar_lea.vmem [#allocation14], %s2183_s4  ;;  %s2308_s21 = int_to_ptr.vmem [resolvable:$true] %s1096_s21 }
  0xdc   : > { %1358 = vmatpush3.bf16.xpose.msra.mxu0 %v453_v4  ;;  %1365 = vmatprep.subr.bf16.mxu1 %v1872_v0  ;;  %v1570_v31 = vld [vmem:[%s2396_s5] sm:$0xff]   ;;  %v1572_v36 = vld [vmem:[%s2396_s5 + $0x8] sm:$0xff]   ;;  %s2313_s16 = sshll.u32 %s426_s15, 4  ;;  %s1078_s2 = scalar_lea.sflag [#allocation4], %s2180_s17  ;;  %s2346_s16 = int_to_ptr.vmem [resolvable:$true] %s2313_s16 }
  0xdd   : > { %1371 = vmatprep.subr.bf16.mxu0 %v1872_v0  ;;  %s1748_s12 = scalar_lea.vmem %s2308_s21, 128  ;;  %p2430_p2 = scmp.ne.s32.totalorder %s2419_s19, 0 }
  0xde   : > { %p1749_p0 = scmp.ne.s32.totalorder %s2308_s21, %s1748_s12  ;;  %s1874_s18 = smov [#allocation13]  }
  0xdf   : > { %1366 = vmatpush3.bf16.msra.mxu1 %v1565_v5  ;;  %s1752_s14 = sshll.u32 %s1874_s18, 4  ;;  %s1753_s14 = int_to_ptr.vmem [resolvable:$false] %s1752_s14 }
  0xe0   : > { %1379 = vmatprep.subr.bf16.mxu1 %v1872_v0  ;;  %p1750_p4 = pnand %p1749_p0, %p2430_p2  ;;  %s1754_s9 = scalar_lea.vmem %s1753_s14, 256 }
  0xe1   : > { %p1755_p5 = scmp.lt.s32.totalorder %s2308_s21, %s1753_s14  ;;  %p1756_p7 = scmp.lt.s32.totalorder %s1754_s9, %s1748_s12 }
  0xe2   : > { %1368 = vmatmul.mubr.msk.bf16.vlgmr.msra.gmra.mrb[0].mxu1 %vm451_vm1, %v450_v2  ;;  %p1751_p10 = pneg %p1750_p4 }
  0xe3   : > { %1360 = vmatmul.mubr.msk.bf16.vlgmr.msra.gmra.mrb[0].mxu0 %vm451_vm1, %v450_v2  ;;  %1381 = vmatprep.mubr.msk.bf16.mxu1 %vm1873_vm0, %v1872_v0  ;;  %p1757_p8 = por %p1756_p7, %p1755_p5 }
  0xe4   : > { %1375 = vmatprep.mubr.msk.bf16.mxu0 %vm1873_vm0, %v1872_v0  ;;  %1372 = vmatpush3.bf16.msra.mxu0 %v1566_v18 }
  0xe5   : > { %1373 = vmatprep.subr.bf16.mxu0 %v1872_v0  ;;  %p1758_p6 = pnand %p1757_p8, %p1751_p10 }
  0xe8   : > { %1374 = vmatpush3.bf16.msra.mxu0 %v1567_v19 }
  0xe9   : > { %1385 = vmatprep.subr.bf16.mxu0 %v1872_v0 }
  0xeb   : > { %1376 = vmatmul.mubr.msk.bf16.vlgmr.msra.gmra.mrb[4].mxu0 %vm451_vm1, %v450_v2 }
  0xec   : > { %1386 = vmatpush3.bf16.msra.mxu0 %v2229_v20  ;;  %1389 = vmatprep.mubr.msk.bf16.mxu0 %vm1873_vm0, %v1872_v0 }
  0xed   : > { %1387 = vmatprep.subr.bf16.mxu0 %v1872_v0 }
  0xf0   : > { %1388 = vmatpush3.bf16.msra.mxu0 %v1569_v27 }
  0xf1   : > { %1393 = vmatprep.subr.bf16.mxu0 %v1872_v0 }
 0x1b5   : > { %v550_v12 = vpop.f32.mrb[0].mxu1 }
 0x1b6   : > { %v489_v6 = vpop.f32.mrb[0].mxu0  ;;  %v1369_v13 = vpop.f32.mrb[1].mxu1  ;;  %v608_v16 = vpack.c.bf16 %v550_v12, %v550_v12 }
 0x1b7   : > { %v1361_v7 = vpop.f32.mrb[1].mxu0  ;;  %v495_v8 = vmul.f32 %v489_v6, %v489_v6  ;;  %v553_v14 = vpop.f32.mrb[2].mxu1 }
 0x1b8   : > { %v492_v9 = vpop.f32.mrb[2].mxu0  ;;  %v1370_v15 = vpop.f32.mrb[3].mxu1  ;;  %v614_v17 = vsel %vm612_vm3, %v608_v16, 0 }
 0x1b9   : > { %v1362_v10 = vpop.f32.mrb[3].mxu0  ;;  %v497_v11 = vsel %vm496_vm2, %v495_v8, 0.0  ;;  %1380 = vmatpush3.bf16.msra.mxu1 %v614_v17 }
 0x1ba   : > { %498 = vadd.xlane.f32.xlu0 %v497_v11  ;;  %1401 = vmatprep.subr.bf16.mxu1 %v1872_v0 }
 0x247   : > { %v499_v21 = vpop.xlane.xlu0 %498 }
 0x248   : > { %1574 = vrsqrt.f32 %v499_v21 }
 0x252   : > { %v1575_v22 = vpop.eup %1574 }
 0x253   : > { %v501_v24 = vmul.f32 %v1575_v22, %v489_v6 }
 0x255   : > { %v502_v25 = vadd.f32 %v501_v24, %v428_v23 }
 0x257   : > { %v2239_v26 = vpack.c.bf16 %v502_v25, %v502_v25 }
 0x259   : > { %1382 = vmatmul.mubr.msk.bf16.vlgmr.msra.gmra.mrb[4].mxu1 %vm496_vm2, %v2239_v26 }
 0x25a   : > { %1405 = vmatprep.mubr.msk.bf16.mxu1 %vm1873_vm0, %v1872_v0  ;;  %1402 = vmatpush3.bf16.msra.mxu1 %v2246_v28 }
 0x25b   : > { %1403 = vmatprep.subr.bf16.mxu1 %v1872_v0 }
 0x25e   : > { %1404 = vmatpush3.bf16.msra.mxu1 %v2250_v29 }
 0x25f   : > { %1409 = vmatprep.subr.bf16.mxu1 %v1872_v0 }
 0x261   : > { %1406 = vmatmul.mubr.msk.bf16.vlgmr.msra.gmra.mrb[8].mxu1 %vm451_vm1, %v450_v2 }
 0x262   : > { %1410 = vmatpush3.bf16.msra.mxu1 %v1564_v3  ;;  %1413 = vmatprep.mubr.msk.bf16.mxu1 %vm1873_vm0, %v1872_v0 }
 0x263   : > { %1411 = vmatprep.subr.bf16.mxu1 %v1872_v0 }
 0x266   : > { %1412 = vmatpush3.bf16.msra.mxu1 %v1565_v5 }
 0x267   : > { %1425 = vmatprep.subr.bf16.mxu1 %v1872_v0 }
 0x32c   : > { %v650_v30 = vpop.f32.mrb[4].mxu1 }
 0x32d   : > { %v656_v32 = vpack.c.bf16 %v650_v30, %v650_v30  ;;  %v1383_v33 = vpop.f32.mrb[5].mxu1 }
 0x32e   : > { %v653_v34 = vpop.f32.mrb[6].mxu1 }
 0x32f   : > { %v1384_v35 = vpop.f32.mrb[7].mxu1  ;;  %1390 = vmatmul.mubr.msk.bf16.vlgmr.msra.gmra.mrb[8].mxu0 %vm451_vm1, %v656_v32 }
 0x330   : > { %1394 = vmatpush3.bf16.msra.mxu0 %v1570_v31  ;;  %1397 = vmatprep.mubr.msk.bf16.mxu0 %vm1873_vm0, %v1872_v0 }
 0x331   : > { %1395 = vmatprep.subr.bf16.mxu0 %v1872_v0 }
 0x334   : > { %1396 = vmatpush3.bf16.msra.mxu0 %v1572_v36  ;;  %v812_v37 = vpop.f32.mrb[8].mxu1 }
 0x335   : > { %1417 = vmatprep.subr.bf16.mxu0 %v1872_v0  ;;  %v1407_v38 = vpop.f32.mrb[9].mxu1 }
 0x336   : > { %v815_v39 = vpop.f32.mrb[10].mxu1 }
 0x337   : > { %1398 = vmatmul.mubr.msk.bf16.vlgmr.msra.gmra.mrb[4].mxu0 %vm451_vm1, %v656_v32  ;;  %v1408_v40 = vpop.f32.mrb[11].mxu1 }
 0x338   : > { %1418 = vmatpush3.bf16.msra.mxu0 %v1566_v18  ;;  %1421 = vmatprep.mubr.msk.bf16.mxu0 %vm1873_vm0, %v1872_v0 }
 0x339   : > { %1419 = vmatprep.subr.bf16.mxu0 %v1872_v0 }
 0x33c   : > { %1420 = vmatpush3.bf16.msra.mxu0 %v1567_v19 }
 0x33d   : > { %1431 = vmatprep.subr.bf16.mxu0 %v1872_v0 }
 0x402   : > { %v706_v41 = vpop.f32.mrb[8].mxu0 }
 0x403   : > { %v1391_v42 = vpop.f32.mrb[9].mxu0 }
 0x404   : > { %v709_v43 = vpop.f32.mrb[10].mxu0 }
 0x405   : > { %v1392_v44 = vpop.f32.mrb[11].mxu0 }
 0x40a   : > { %v758_v45 = vpop.f32.mrb[4].mxu0 }
 0x40b   : > { %v764_v46 = vmax.f32 %v758_v45, 0.0  ;;  %v1399_v47 = vpop.f32.mrb[5].mxu0 }
 0x40c   : > { %v761_v48 = vpop.f32.mrb[6].mxu0 }
 0x40d   : > { %v765_v49 = vmul.f32 %v764_v46, %v706_v41  ;;  %v1400_v50 = vpop.f32.mrb[7].mxu0 }
 0x40f   : > { %v813_v51 = vadd.f32 %v812_v37, %v765_v49 }
 0x411   : > { %v819_v52 = vpack.c.bf16 %v813_v51, %v813_v51 }
 0x413   : > { %1414 = vmatmul.mubr.msk.bf16.vlgmr.msra.gmra.mrb[12].mxu1 %vm451_vm1, %v819_v52  ;;  %1422 = vmatmul.mubr.msk.bf16.vlgmr.msra.gmra.mrb[12].mxu0 %vm451_vm1, %v819_v52 }
 0x414   : > { %1427 = vmatprep.mubr.msk.bf16.mxu1 %vm1873_vm0, %v1872_v0  ;;  %1432 = vmatpush3.bf16.msra.mxu0 %v2229_v20 }
 0x415   : > { %1433 = vmatprep.subr.bf16.mxu0 %v1872_v0  ;;  %1435 = vmatprep.mubr.msk.bf16.mxu0 %vm1873_vm0, %v1872_v0 }
 0x418   : > { %1434 = vmatpush3.bf16.msra.mxu0 %v1569_v27 }
 0x419   : > { %1439 = vmatprep.subr.bf16.mxu0 %v1872_v0 }
 0x4e6   : > { %v857_v53 = vpop.f32.mrb[12].mxu1 }
 0x4e7   : > { %v903_v54 = vpack.c.bf16 %v857_v53, %v857_v53  ;;  %v1415_v55 = vpop.f32.mrb[13].mxu1 }
 0x4e8   : > { %v860_v56 = vpop.f32.mrb[14].mxu1 }
 0x4e9   : > { %v905_v57 = vsel %vm612_vm3, %v903_v54, 0  ;;  %v1416_v58 = vpop.f32.mrb[15].mxu1 }
 0x4ea   : > { %1426 = vmatpush3.bf16.msra.mxu1 %v905_v57 }
 0x4eb   : > { %1447 = vmatprep.subr.bf16.mxu1 %v1872_v0 }
 0x4ed   : > { %1428 = vmatmul.mubr.msk.bf16.vlgmr.msra.gmra.mrb[16].mxu1 %vm496_vm2, %v2239_v26 }
 0x4ee   : > { %1448 = vmatpush3.bf16.msra.mxu1 %v2246_v28  ;;  %1451 = vmatprep.mubr.msk.bf16.mxu1 %vm1873_vm0, %v1872_v0 }
 0x4ef   : > { %1449 = vmatprep.subr.bf16.mxu1 %v1872_v0 }
 0x4f2   : > { %1450 = vmatpush3.bf16.msra.mxu1 %v2250_v29 }
 0x4f5   : > { %1452 = vmatmul.mubr.msk.bf16.vlgmr.msra.gmra.mrb[20].mxu1 %vm451_vm1, %v819_v52 }
 0x5c0   : > { %v941_v59 = vpop.f32.mrb[16].mxu1 }
 0x5c1   : > { %v947_v60 = vpack.c.bf16 %v941_v59, %v941_v59  ;;  %v1429_v61 = vpop.f32.mrb[17].mxu1 }
 0x5c2   : > { %v944_v62 = vpop.f32.mrb[18].mxu1 }
 0x5c3   : > { %v1430_v63 = vpop.f32.mrb[19].mxu1  ;;  %1436 = vmatmul.mubr.msk.bf16.vlgmr.msra.gmra.mrb[16].mxu0 %vm451_vm1, %v947_v60 }
 0x5c4   : > { %1440 = vmatpush3.bf16.msra.mxu0 %v1570_v31  ;;  %1443 = vmatprep.mubr.msk.bf16.mxu0 %vm1873_vm0, %v1872_v0 }
 0x5c5   : > { %1441 = vmatprep.subr.bf16.mxu0 %v1872_v0 }
 0x5c8   : > { %1442 = vmatpush3.bf16.msra.mxu0 %v1572_v36  ;;  %v1067_v1 = vpop.f32.mrb[20].mxu1 }
 0x5c9   : > { %v1453_v2 = vpop.f32.mrb[21].mxu1 }
 0x5ca   : > { %v1070_v3 = vpop.f32.mrb[22].mxu1 }
 0x5cb   : > { %1444 = vmatmul.mubr.msk.bf16.vlgmr.msra.gmra.mrb[12].mxu0 %vm451_vm1, %v947_v60  ;;  %v1454_v4 = vpop.f32.mrb[23].mxu1 }
 0x696   : > { %v985_v5 = vpop.f32.mrb[16].mxu0 }
 0x697   : > { %v1437_v6 = vpop.f32.mrb[17].mxu0 }
 0x698   : > { %v988_v7 = vpop.f32.mrb[18].mxu0 }
 0x699   : > { %v1438_v8 = vpop.f32.mrb[19].mxu0 }
 0x69e   : > { %v1025_v9 = vpop.f32.mrb[12].mxu0 }
 0x69f   : > { %v1031_v10 = vmax.f32 %v1025_v9, 0.0  ;;  %v1445_v11 = vpop.f32.mrb[13].mxu0 }
 0x6a0   : > { %v1028_v0 = vpop.f32.mrb[14].mxu0 }
 0x6a1   : > { %v1032_v12 = vmul.f32 %v1031_v10, %v985_v5  ;;  %v1446_v13 = vpop.f32.mrb[15].mxu0 }
 0x6a3   : > { %v1068_v14 = vadd.f32 %v1067_v1, %v1032_v12 }
 0x6a5   : > { %v1073_v15 = vadd.f32 %v1068_v14, %v813_v51  ;;  %1074 = vst.msk [vmem:[%s419_s20] sm:$0xff] %vm451_vm1, %v1068_v14 }
 0x6a6   : > { %1761 = shalt.err (!%p1758_p6)
}
 0x6a7   : > { %s1762_s6 = scalar_lea.hbm %s2306_s10, 128  ;;  %s1766_s20 = scalar_lea.hbm %s2398_s7, 256 }
 0x6a8   : > { %p1763_p11 = scmp.ne.s32.totalorder %s2306_s10, %s1762_s6  ;;  %p1767_p12 = scmp.lt.u32.totalorder %s2306_s10, %s2398_s7 }
 0x6a9   : > { %p1768_p3 = scmp.lt.u32.totalorder %s1766_s20, %s1762_s6  ;;  %p1770_p0 = scmp.lt.u32.totalorder %s1762_s6, %s2306_s10 }
 0x6aa   : > { %p1764_p1 = pnand %p1763_p11, %p2430_p2 }
 0x6ab   : > { %p1769_p13 = por %p1768_p3, %p1767_p12 }
 0x6ac   : > { %p1765_p9 = pneg %p1764_p1 }
 0x6ad   : > { %p1771_p4 = por %p1770_p0, %p1769_p13 }
 0x6af   : > { %p1772_p10 = pnand %p1771_p4, %p1765_p9 }
 0x6b1   : > { %1775 = shalt.err (!%p1772_p10)
}
 0x6b2   : > { %1483 = dma.vmem_to_hbm [thread:$0]  (%p2430_p2), %s2308_s21, 128, %s2306_s10, %s1078_s2   ;;  %v1075_v16 = vmul.f32 0.5, %v1073_v15 }
 0x6b3   : > { %s2343_s14 = scalar_lea.hbm %s2399_s8, %s1317_s26  ;;  %s1083_s9 = scalar_lea.sflag [#allocation15], %s2180_s17 }
 0x6b4   : > { %1076 = vst.msk [vmem:[%s426_s15] sm:$0xff] %vm451_vm1, %v1075_v16  ;;  %s1776_s6 = scalar_lea.vmem %s2346_s16, 128  ;;  %s1875_s11 = smov [#allocation14]  }
 0x6b5   : > { %p1777_p5 = scmp.ne.s32.totalorder %s2346_s16, %s1776_s6  ;;  %s1780_s21 = sshll.u32 %s1875_s11, 4  ;;  %s1781_s21 = int_to_ptr.vmem [resolvable:$false] %s1780_s21 }
 0x6b6   : > { %s1782_s10 = scalar_lea.vmem %s1781_s21, 256  ;;  %p1783_p6 = scmp.lt.s32.totalorder %s2346_s16, %s1781_s21 }
 0x6b7   : > { %p1778_p7 = pnand %p1777_p5, %p2430_p2  ;;  %p1784_p11 = scmp.lt.s32.totalorder %s1782_s10, %s1776_s6 }
 0x6b9   : > { %p1779_p8 = pneg %p1778_p7  ;;  %p1785_p1 = por %p1784_p11, %p1783_p6 }
 0x6bb   : > { %p1786_p9 = pnand %p1785_p1, %p1779_p8 }
 0x6bd   : > { %1789 = shalt.err (!%p1786_p9)
}
 0x6be   : > { %s1790_s17 = scalar_lea.hbm %s2343_s14, 128  ;;  %s1794_s15 = scalar_lea.hbm %s2399_s8, 256 }
 0x6bf   : > { %p1791_p12 = scmp.ne.s32.totalorder %s2343_s14, %s1790_s17  ;;  %p1795_p0 = scmp.lt.u32.totalorder %s2343_s14, %s2399_s8 }
 0x6c0   : > { %p1796_p4 = scmp.lt.u32.totalorder %s1794_s15, %s1790_s17  ;;  %p1798_p5 = scmp.lt.u32.totalorder %s1790_s17, %s2343_s14 }
 0x6c1   : > { %p1792_p3 = pnand %p1791_p12, %p2430_p2 }
 0x6c2   : > { %p1797_p10 = por %p1796_p4, %p1795_p0 }
 0x6c3   : > { %p1793_p13 = pneg %p1792_p3 }
 0x6c4   : > { %p1799_p7 = por %p1798_p5, %p1797_p10 }
 0x6c6   : > { %p1800_p8 = pnand %p1799_p7, %p1793_p13 }
 0x6c8   : > { %1803 = shalt.err (!%p1800_p8)
}
 0x6c9   : > { %1484 = dma.vmem_to_hbm [thread:$0]  (%p2430_p2), %s2346_s16, 128, %s2343_s14, %s1083_s9  }
 0x6ca PF: > { %s1121_s13 = sand.u32 1, %s1850_s27   ;;  %p2431_p6 = scmp.ne.s32.totalorder %s2420_s24, 0 }
 0x6cb   : > { %p2432_p11 = scmp.ge.s32.totalorder %s1862_s30, 2  ;;  %s1122_s20 = scalar_lea.sflag [#allocation4], %s1121_s13 }
 0x6cd   : > { %p1508_p1 = pnand %p2432_p11, %p2431_p6 }
 0x6cf   : > { %1841 = dma.done.wait (!%p1508_p1), %s1122_s20, 128  }
 0x6d0   : > { %1843 = vsyncadd (!%p1508_p1), %s1122_s20, 4294967168  ;;  %s1131_s3 = scalar_lea.sflag [#allocation15], %s1121_s13 }
 0x6d1   : > { %1845 = dma.done.wait (!%p1508_p1), %s1131_s3, 128  }
 0x6d2   : > { %1847 = vsyncadd (!%p1508_p1), %s1131_s3, 4294967168  ;;  %s2433_s19 = sld [smem:[#allocation23_spill]]  ;;  %p30_p2 = scmp.ge.s32.totalorder %s2073_s23, 4  }
 0x6d3   : > { %s2434_s27 = smov %s1854_s28  ;;  %s2435_s28 = smov %s1858_s29 }
 0x6d4   : > { %s2437_s30 = smov %s2073_s23  ;;  %32 = sbr.rel (!%p30_p2) target bundleno = 16 (0x10), region = 139 }
 0x6d8   : > { %s2436_s29 = smov %s2433_s19 }
 0x6db   :  { %1136 = vsyncpa [#allocation3], 1 }
 0x6dc   :  { %1138 = vsyncpa [#allocation3 + $0x1], 1 }
 0x6dd   :  { %1139 = vsyncpa [#allocation6], 1 }
 0x6de   :  { %1141 = vsyncpa [#allocation6 + $0x1], 1 }
 0x6df   :  { %1142 = vsyncpa [#allocation9], 1 }
 0x6e0   :  { %1143 = vsyncpa [#allocation12], 1 }
 0x6e1   :  { %1144 = vsyncpa [#allocation4], 1 }
 0x6e2   :  { %1146 = vsyncpa [#allocation4 + $0x1], 1 }
 0x6e3   :  { %1147 = vsyncpa [#allocation15], 1 }
 0x6e4   :  { %1149 = vsyncpa [#allocation15 + $0x1], 1 }

</bundles_post_ra>
